<compile_context>
chip_gen: v7x
topology: tpu7x:2x2x1
jax: 0.10.0
libtpu: 0.0.40
codegen_flags: <defaults>
</compile_context>

<pallas_src>
import functools

import jax
import jax.numpy as jnp
from jax.experimental import pallas as pl
from jax.experimental.pallas import tpu as pltpu

LANES = 128
MAX_TILE_ROWS = 2048   # 1 MiB per f32 input tile


def _berhu_kernel(pred_ref, target_ref, out_ref,
                  sabs_ref, ssq_ref, scnt_ref, smax_ref,
                  *, total_rows, tail_mask):
    """Accumulates masked sum|d|, sum d^2, count, max|d|; emits berHu loss."""
    i = pl.program_id(0)

    @pl.when(i == 0)
    def _init():
        sabs_ref[...] = jnp.zeros_like(sabs_ref)
        ssq_ref[...] = jnp.zeros_like(ssq_ref)
        scnt_ref[...] = jnp.zeros_like(scnt_ref)
        smax_ref[...] = jnp.zeros_like(smax_ref)

    t = target_ref[...].astype(jnp.float32)
    p = pred_ref[...].astype(jnp.float32)
    tile_rows = t.shape[0]

    mask = t > 0.0                        # valid_mask = (target > 0)
    if tail_mask:
        # Rows past the true array extent (partial last block) contain
        # unspecified data -> exclude them with a global-row bound.
        row = jax.lax.broadcasted_iota(jnp.int32, t.shape, 0)
        in_bounds = (i * tile_rows + row) < total_rows
        mask = jnp.logical_and(mask, in_bounds)

    diff = t - p                          # diff = target - pred
    ad = jnp.where(mask, jnp.abs(diff), 0.0)
    sq = jnp.where(mask, diff * diff, 0.0)
    cm = mask.astype(jnp.float32)

    # Fold the (tile_rows, 128) tile into (8, 128) partials (cheap VPU adds
    # over native sublane tiles) so the resident accumulators stay tiny.
    g = tile_rows // 8
    sabs_ref[...] += ad.reshape(g, 8, LANES).sum(axis=0)
    ssq_ref[...] += sq.reshape(g, 8, LANES).sum(axis=0)
    scnt_ref[...] += cm.reshape(g, 8, LANES).sum(axis=0)
    smax_ref[...] = jnp.maximum(smax_ref[...],
                                ad.reshape(g, 8, LANES).max(axis=0))

    @pl.when(i == pl.num_programs(0) - 1)
    def _finalize():
        sum_abs = jnp.sum(sabs_ref[...])
        sum_sq = jnp.sum(ssq_ref[...])
        cnt = jnp.sum(scnt_ref[...])
        max_abs = jnp.max(smax_ref[...])
        c = 0.2 * max_abs
        l1 = sum_abs / cnt                # mean over valid elements
        l2 = sum_sq / cnt
        # Data-dependent branch in PyTorch -> jnp.where here.
        out_ref[0] = jnp.where(l1 > c, (l2 + c * c) / (2.0 * c), l1)


def masked_berhu_loss(pred, target):
    """Forward pass of MaskedberHuLoss (matches the PyTorch module)."""
    assert pred.ndim == target.ndim, "inconsistent dimensions"
    n = pred.size

    pred_flat = pred.reshape(-1)
    target_flat = target.reshape(-1)

    # Only pad when the element count is not lane (128) aligned; padded
    # target entries are 0 -> excluded by the (target > 0) mask.
    if n % LANES != 0:
        pad = LANES - n % LANES
        pred_flat = jnp.pad(pred_flat, (0, pad))
        target_flat = jnp.pad(target_flat, (0, pad))

    rows = pred_flat.size // LANES
    tile_rows = int(min(MAX_TILE_ROWS, 8 * pl.cdiv(rows, 8)))
    grid = (int(pl.cdiv(rows, tile_rows)),)
    tail_mask = (rows % tile_rows) != 0

    pred2d = pred_flat.reshape(rows, LANES)
    target2d = target_flat.reshape(rows, LANES)

    kernel = functools.partial(_berhu_kernel, total_rows=rows,
                               tail_mask=tail_mask)

    out = pl.pallas_call(
        kernel,
        out_shape=jax.ShapeDtypeStruct((1,), jnp.float32),
        grid_spec=pltpu.PrefetchScalarGridSpec(
            num_scalar_prefetch=0,
            grid=grid,
            in_specs=[
                pl.BlockSpec((tile_rows, LANES), lambda i: (i, 0)),
                pl.BlockSpec((tile_rows, LANES), lambda i: (i, 0)),
            ],
            out_specs=pl.BlockSpec(memory_space=pltpu.SMEM),
            scratch_shapes=[
                pltpu.VMEM((8, LANES), jnp.float32),  # sum |diff|
                pltpu.VMEM((8, LANES), jnp.float32),  # sum diff^2
                pltpu.VMEM((8, LANES), jnp.float32),  # valid count
                pltpu.VMEM((8, LANES), jnp.float32),  # max |diff|
            ],
        ),
        compiler_params=pltpu.CompilerParams(
            dimension_semantics=("arbitrary",)),
    )(pred2d, target2d)
    return out[0]


def _reference(pred, target):
    mask = target > 0
    diff = jnp.where(mask, target - pred, 0.0)
    cnt = jnp.sum(mask).astype(jnp.float32)
    c = 0.2 * jnp.max(jnp.abs(diff))
    l1 = jnp.sum(jnp.abs(diff)) / cnt
    l2 = jnp.sum(diff ** 2) / cnt
    return jnp.where(l1 > c, (l2 + c * c) / (2.0 * c), l1)


if __name__ == "__main__":
    key = jax.random.PRNGKey(0)
    k1, k2 = jax.random.split(key)
    pred = jax.random.normal(k1, (2, 4, 16, 16), dtype=jnp.float32)
    target = jax.random.normal(k2, (2, 4, 16, 16), dtype=jnp.float32)

    loss = jax.block_until_ready(masked_berhu_loss(pred, target))
    ref = _reference(pred, target)
    assert jnp.allclose(loss, ref, rtol=1e-5, atol=1e-6), (loss, ref)
    print("KERNEL_OK")
</pallas_src>

<mosaic_0001>
module attributes {stable_mosaic.version = 11 : i64} {
  func.func @_berhu_kernel(%arg0: i32, %arg1: memref<16x128xf32, #tpu.memory_space<vmem>>, %arg2: memref<16x128xf32, #tpu.memory_space<vmem>>, %arg3: memref<1xf32, #tpu.memory_space<smem>>, %arg4: memref<8x128xf32, #tpu.memory_space<vmem>>, %arg5: memref<8x128xf32, #tpu.memory_space<vmem>>, %arg6: memref<8x128xf32, #tpu.memory_space<vmem>>, %arg7: memref<8x128xf32, #tpu.memory_space<vmem>>) attributes {dimension_semantics = [#tpu.dimension_semantics<arbitrary>], iteration_bounds = array<i64: 1>, scalar_prefetch = 0 : i64, scratch_operands = 4 : i64, tpu.core_type = #tpu.core_type<tc>, window_params = [{transform_indices = @transform_0, window_bounds = array<i64: 16, 128>}, {transform_indices = @transform_1, window_bounds = array<i64: 16, 128>}, {transform_indices = @transform_2, window_bounds = array<i64: 1>}]} {
    %c0_i32 = arith.constant 0 : i32
    %0 = arith.cmpi eq, %arg0, %c0_i32 : i32
    %1 = arith.extui %0 : i1 to i32
    %c0_i32_0 = arith.constant 0 : i32
    %2 = arith.cmpi ne, %1, %c0_i32_0 : i32
    scf.if %2 {
      %cst_28 = arith.constant 0.000000e+00 : f32
      %39 = vector.broadcast %cst_28 : f32 to vector<8x128xf32>
      %c0_29 = arith.constant 0 : index
      %c0_30 = arith.constant 0 : index
      %40 = vector.load %arg4[%c0_29, %c0_30] : memref<8x128xf32, #tpu.memory_space<vmem>>, vector<8x128xf32>
      tpu.vector_store %arg4[%c0_29, %c0_30], %39 {strides = array<i32>} : memref<8x128xf32, #tpu.memory_space<vmem>>, vector<8x128xf32>,
      %cst_31 = arith.constant 0.000000e+00 : f32
      %41 = vector.broadcast %cst_31 : f32 to vector<8x128xf32>
      %c0_32 = arith.constant 0 : index
      %c0_33 = arith.constant 0 : index
      %42 = vector.load %arg5[%c0_32, %c0_33] : memref<8x128xf32, #tpu.memory_space<vmem>>, vector<8x128xf32>
      tpu.vector_store %arg5[%c0_32, %c0_33], %41 {strides = array<i32>} : memref<8x128xf32, #tpu.memory_space<vmem>>, vector<8x128xf32>,
      %cst_34 = arith.constant 0.000000e+00 : f32
      %43 = vector.broadcast %cst_34 : f32 to vector<8x128xf32>
      %c0_35 = arith.constant 0 : index
      %c0_36 = arith.constant 0 : index
      %44 = vector.load %arg6[%c0_35, %c0_36] : memref<8x128xf32, #tpu.memory_space<vmem>>, vector<8x128xf32>
      tpu.vector_store %arg6[%c0_35, %c0_36], %43 {strides = array<i32>} : memref<8x128xf32, #tpu.memory_space<vmem>>, vector<8x128xf32>,
      %cst_37 = arith.constant 0.000000e+00 : f32
      %45 = vector.broadcast %cst_37 : f32 to vector<8x128xf32>
      %c0_38 = arith.constant 0 : index
      %c0_39 = arith.constant 0 : index
      %46 = vector.load %arg7[%c0_38, %c0_39] : memref<8x128xf32, #tpu.memory_space<vmem>>, vector<8x128xf32>
      tpu.vector_store %arg7[%c0_38, %c0_39], %45 {strides = array<i32>} : memref<8x128xf32, #tpu.memory_space<vmem>>, vector<8x128xf32>,
    } else {
    }
    %c0 = arith.constant 0 : index
    %c0_1 = arith.constant 0 : index
    %3 = vector.load %arg2[%c0, %c0_1] : memref<16x128xf32, #tpu.memory_space<vmem>>, vector<16x128xf32>
    %c0_2 = arith.constant 0 : index
    %c0_3 = arith.constant 0 : index
    %4 = vector.load %arg1[%c0_2, %c0_3] : memref<16x128xf32, #tpu.memory_space<vmem>>, vector<16x128xf32>
    %cst = arith.constant 0.000000e+00 : f32
    %5 = vector.broadcast %cst : f32 to vector<16x128xf32>
    %6 = arith.cmpf ogt, %3, %5 : vector<16x128xf32>
    %7 = arith.subf %3, %4 : vector<16x128xf32>
    %8 = math.absf %7 : vector<16x128xf32>
    %cst_4 = arith.constant 0.000000e+00 : f32
    %9 = vector.broadcast %cst_4 : f32 to vector<16x128xf32>
    %10 = arith.select %6, %8, %9 : vector<16x128xi1>, vector<16x128xf32>
    %11 = arith.mulf %7, %7 : vector<16x128xf32>
    %cst_5 = arith.constant 0.000000e+00 : f32
    %12 = vector.broadcast %cst_5 : f32 to vector<16x128xf32>
    %13 = arith.select %6, %11, %12 : vector<16x128xi1>, vector<16x128xf32>
    %14 = arith.extui %6 : vector<16x128xi1> to vector<16x128xi32>
    %15 = arith.sitofp %14 : vector<16x128xi32> to vector<16x128xf32>
    %c0_6 = arith.constant 0 : index
    %c0_7 = arith.constant 0 : index
    %16 = vector.load %arg4[%c0_6, %c0_7] : memref<8x128xf32, #tpu.memory_space<vmem>>, vector<8x128xf32>
    %17 = vector.shape_cast %10 : vector<16x128xf32> to vector<2x8x128xf32>
    %cst_8 = arith.constant dense<0.000000e+00> : vector<8x128xf32>
    %18 = vector.multi_reduction <add>, %17, %cst_8 [0] : vector<2x8x128xf32> to vector<8x128xf32>
    %19 = arith.addf %16, %18 : vector<8x128xf32>
    %c0_9 = arith.constant 0 : index
    %c0_10 = arith.constant 0 : index
    %20 = vector.load %arg4[%c0_9, %c0_10] : memref<8x128xf32, #tpu.memory_space<vmem>>, vector<8x128xf32>
    tpu.vector_store %arg4[%c0_9, %c0_10], %19 {strides = array<i32>} : memref<8x128xf32, #tpu.memory_space<vmem>>, vector<8x128xf32>,
    %c0_11 = arith.constant 0 : index
    %c0_12 = arith.constant 0 : index
    %21 = vector.load %arg5[%c0_11, %c0_12] : memref<8x128xf32, #tpu.memory_space<vmem>>, vector<8x128xf32>
    %22 = vector.shape_cast %13 : vector<16x128xf32> to vector<2x8x128xf32>
    %cst_13 = arith.constant dense<0.000000e+00> : vector<8x128xf32>
    %23 = vector.multi_reduction <add>, %22, %cst_13 [0] : vector<2x8x128xf32> to vector<8x128xf32>
    %24 = arith.addf %21, %23 : vector<8x128xf32>
    %c0_14 = arith.constant 0 : index
    %c0_15 = arith.constant 0 : index
    %25 = vector.load %arg5[%c0_14, %c0_15] : memref<8x128xf32, #tpu.memory_space<vmem>>, vector<8x128xf32>
    tpu.vector_store %arg5[%c0_14, %c0_15], %24 {strides = array<i32>} : memref<8x128xf32, #tpu.memory_space<vmem>>, vector<8x128xf32>,
    %c0_16 = arith.constant 0 : index
    %c0_17 = arith.constant 0 : index
    %26 = vector.load %arg6[%c0_16, %c0_17] : memref<8x128xf32, #tpu.memory_space<vmem>>, vector<8x128xf32>
    %27 = vector.shape_cast %15 : vector<16x128xf32> to vector<2x8x128xf32>
    %cst_18 = arith.constant dense<0.000000e+00> : vector<8x128xf32>
    %28 = vector.multi_reduction <add>, %27, %cst_18 [0] : vector<2x8x128xf32> to vector<8x128xf32>
    %29 = arith.addf %26, %28 : vector<8x128xf32>
    %c0_19 = arith.constant 0 : index
    %c0_20 = arith.constant 0 : index
    %30 = vector.load %arg6[%c0_19, %c0_20] : memref<8x128xf32, #tpu.memory_space<vmem>>, vector<8x128xf32>
    tpu.vector_store %arg6[%c0_19, %c0_20], %29 {strides = array<i32>} : memref<8x128xf32, #tpu.memory_space<vmem>>, vector<8x128xf32>,
    %c0_21 = arith.constant 0 : index
    %c0_22 = arith.constant 0 : index
    %31 = vector.load %arg7[%c0_21, %c0_22] : memref<8x128xf32, #tpu.memory_space<vmem>>, vector<8x128xf32>
    %32 = vector.shape_cast %10 : vector<16x128xf32> to vector<2x8x128xf32>
    %cst_23 = arith.constant dense<0xFF800000> : vector<8x128xf32>
    %33 = vector.multi_reduction <maximumf>, %32, %cst_23 [0] : vector<2x8x128xf32> to vector<8x128xf32>
    %34 = arith.maximumf %31, %33 : vector<8x128xf32>
    %c0_24 = arith.constant 0 : index
    %c0_25 = arith.constant 0 : index
    %35 = vector.load %arg7[%c0_24, %c0_25] : memref<8x128xf32, #tpu.memory_space<vmem>>, vector<8x128xf32>
    tpu.vector_store %arg7[%c0_24, %c0_25], %34 {strides = array<i32>} : memref<8x128xf32, #tpu.memory_space<vmem>>, vector<8x128xf32>,
    %c0_i32_26 = arith.constant 0 : i32
    %36 = arith.cmpi eq, %arg0, %c0_i32_26 : i32
    %37 = arith.extui %36 : i1 to i32
    %c0_i32_27 = arith.constant 0 : i32
    %38 = arith.cmpi ne, %37, %c0_i32_27 : i32
    scf.if %38 {
      %c0_28 = arith.constant 0 : index
      %c0_29 = arith.constant 0 : index
      %39 = vector.load %arg4[%c0_28, %c0_29] : memref<8x128xf32, #tpu.memory_space<vmem>>, vector<8x128xf32>
      %40 = vector.shape_cast %39 : vector<8x128xf32> to vector<1x8x128xf32>
      %cst_30 = arith.constant dense<0.000000e+00> : vector<1xf32>
      %41 = vector.multi_reduction <add>, %40, %cst_30 [1, 2] : vector<1x8x128xf32> to vector<1xf32>
      %42 = vector.shape_cast %41 : vector<1xf32> to vector<1x1x1xf32>
      %43 = vector.extract %42[0, 0, 0] : f32 from vector<1x1x1xf32>
      %c0_31 = arith.constant 0 : index
      %c0_32 = arith.constant 0 : index
      %44 = vector.load %arg5[%c0_31, %c0_32] : memref<8x128xf32, #tpu.memory_space<vmem>>, vector<8x128xf32>
      %45 = vector.shape_cast %44 : vector<8x128xf32> to vector<1x8x128xf32>
      %cst_33 = arith.constant dense<0.000000e+00> : vector<1xf32>
      %46 = vector.multi_reduction <add>, %45, %cst_33 [1, 2] : vector<1x8x128xf32> to vector<1xf32>
      %47 = vector.shape_cast %46 : vector<1xf32> to vector<1x1x1xf32>
      %48 = vector.extract %47[0, 0, 0] : f32 from vector<1x1x1xf32>
      %c0_34 = arith.constant 0 : index
      %c0_35 = arith.constant 0 : index
      %49 = vector.load %arg6[%c0_34, %c0_35] : memref<8x128xf32, #tpu.memory_space<vmem>>, vector<8x128xf32>
      %50 = vector.shape_cast %49 : vector<8x128xf32> to vector<1x8x128xf32>
      %cst_36 = arith.constant dense<0.000000e+00> : vector<1xf32>
      %51 = vector.multi_reduction <add>, %50, %cst_36 [1, 2] : vector<1x8x128xf32> to vector<1xf32>
      %52 = vector.shape_cast %51 : vector<1xf32> to vector<1x1x1xf32>
      %53 = vector.extract %52[0, 0, 0] : f32 from vector<1x1x1xf32>
      %c0_37 = arith.constant 0 : index
      %c0_38 = arith.constant 0 : index
      %54 = vector.load %arg7[%c0_37, %c0_38] : memref<8x128xf32, #tpu.memory_space<vmem>>, vector<8x128xf32>
      %55 = vector.shape_cast %54 : vector<8x128xf32> to vector<1x8x128xf32>
      %cst_39 = arith.constant dense<0xFF800000> : vector<1xf32>
      %56 = vector.multi_reduction <maximumf>, %55, %cst_39 [1, 2] : vector<1x8x128xf32> to vector<1xf32>
      %57 = vector.shape_cast %56 : vector<1xf32> to vector<1x1x1xf32>
      %58 = vector.extract %57[0, 0, 0] : f32 from vector<1x1x1xf32>
      %cst_40 = arith.constant 2.000000e-01 : f32
      %59 = arith.mulf %cst_40, %58 : f32
      %60 = arith.divf %43, %53 : f32
      %61 = arith.divf %48, %53 : f32
      %62 = arith.cmpf ogt, %60, %59 : f32
      %63 = arith.mulf %59, %59 : f32
      %64 = arith.addf %61, %63 : f32
      %cst_41 = arith.constant 2.000000e+00 : f32
      %65 = arith.mulf %cst_41, %59 : f32
      %66 = arith.divf %64, %65 : f32
      %67 = arith.select %62, %66, %60 : f32
      %c0_42 = arith.constant 0 : index
      %68 = memref.load %arg3[%c0_42] : memref<1xf32, #tpu.memory_space<smem>>
      memref.store %67, %arg3[%c0_42] : memref<1xf32, #tpu.memory_space<smem>>
    } else {
    }
    return
  }
  func.func @transform_0(%arg0: i32) -> (i32, i32) {
    %c0_i32 = arith.constant 0 : i32
    %c0_i32_0 = arith.constant 0 : i32
    return %arg0, %c0_i32 : i32, i32
  }
  func.func @transform_1(%arg0: i32) -> (i32, i32) {
    %c0_i32 = arith.constant 0 : i32
    %c0_i32_0 = arith.constant 0 : i32
    return %arg0, %c0_i32 : i32, i32
  }
  func.func @transform_2(%arg0: i32) -> i32 {
    %c0_i32 = arith.constant 0 : i32
    %c0_i32_0 = arith.constant 0 : i32
    return %c0_i32 : i32
  }
}

</mosaic_0001>

<bundles_post_ra>
// kernel: tpu_custom_call.1
= control target key start
LH: loop header
LB: loop body
LE: loop exit
PB: predicated region body
PF: predicated region fallthrough
CT: control target
= control target key end

     0   :  { %7 = vsyncpa [#allocation7], 0  ;;  %s309_s0 = inlined_call_operand.hbm [shape: f32[16,128], index: 0, kind: input, shape index: {}]   ;;  %s310_s1 = inlined_call_operand.hbm [shape: f32[16,128], index: 1, kind: input, shape index: {}]   ;;  %s311_s2 = inlined_call_operand.hbm [shape: f32[1], index: 2, kind: output, shape index: {}]  }
   0x1   :  { %8 = vsyncpa [#allocation10], 0 }
   0x2   :  { %9 = vsyncpa [#allocation8], 0  ;;  %s246_s9 = smov [#allocation6]   ;;  %s186_s13 = scalar_lea.hbm %s309_s0, 256 }
   0x3   :  { %s15_s10 = sshll.u32 %s246_s9, 4  ;;  %p187_p0 = scmp.ne.s32.totalorder %s309_s0, %s186_s13  ;;  %s16_s10 = int_to_ptr.vmem [resolvable:$true] %s15_s10 }
   0x4   :  { %p190_p1 = scmp.lt.u32.totalorder %s186_s13, %s309_s0 }
   0x6   :  { %p192_p2 = pnand %p190_p1, %p187_p0 }
   0x8   :  { %195 = shalt.err (!%p192_p2)
}
   0x9   :  { %s196_s18 = scalar_lea.vmem %s16_s10, 256  ;;  %p201_p4 = scmp.lt.s32.totalorder %s16_s10, %s16_s10 }
   0xa   :  { %p197_p3 = scmp.ne.s32.totalorder %s16_s10, %s196_s18  ;;  %p202_p5 = scmp.lt.s32.totalorder %s196_s18, %s196_s18 }
   0xc   :  { %p203_p6 = por %p202_p5, %p201_p4 }
   0xe   :  { %p204_p7 = pnand %p203_p6, %p197_p3 }
  0x10   :  { %207 = shalt.err (!%p204_p7)
}
  0x11   :  { %s247_s19 = smov 128   ;;  %s248_s20 = smov 8  }
  0x12   :  { %21 = dma.hbm_to_vmem [thread:$0]  %s309_s0, 256, %s16_s10, [#allocation7], %s247_s19, %s247_s19, %s248_s20  }
  0x13   :  { %s249_s23 = smov [#allocation9]   ;;  %s208_s27 = scalar_lea.hbm %s310_s1, 256 }
  0x14   :  { %s27_s24 = sshll.u32 %s249_s23, 4  ;;  %p209_p8 = scmp.ne.s32.totalorder %s310_s1, %s208_s27  ;;  %s28_s24 = int_to_ptr.vmem [resolvable:$true] %s27_s24 }
  0x15   :  { %p212_p9 = scmp.lt.u32.totalorder %s208_s27, %s310_s1 }
  0x17   :  { %p214_p10 = pnand %p212_p9, %p209_p8 }
  0x19   :  { %217 = shalt.err (!%p214_p10)
}
  0x1a   :  { %s218_s4 = scalar_lea.vmem %s28_s24, 256  ;;  %p223_p12 = scmp.lt.s32.totalorder %s28_s24, %s28_s24 }
  0x1b   :  { %p219_p11 = scmp.ne.s32.totalorder %s28_s24, %s218_s4  ;;  %p224_p13 = scmp.lt.s32.totalorder %s218_s4, %s218_s4 }
  0x1d   :  { %p225_p0 = por %p224_p13, %p223_p12 }
  0x1f   :  { %p226_p1 = pnand %p225_p0, %p219_p11 }
  0x21   :  { %229 = shalt.err (!%p226_p1)
}
  0x22   :  { %33 = dma.hbm_to_vmem [thread:$0]  %s310_s1, 256, %s28_s24, [#allocation10], %s247_s19, %s247_s19, %s248_s20  }
  0x23   :  { %240 = dma.done.wait [#allocation7], 256  }
  0x24   :  { %241 = vsyncadd [#allocation7], 4294967040 }
  0x25   :  { %242 = dma.done.wait [#allocation10], 256  }
  0x26   :  { %243 = vsyncadd [#allocation10], 4294967040  ;;  %v48_v0 = vld [vmem:[#allocation9] sm:$0xff]  ;;  %v49_v1 = vld [vmem:[#allocation9 + $0x8] sm:$0xff]  ;;  %v250_v5 = vmov 0.0   ;;  %s230_s20 = scalar_lea.hbm %s311_s2, 16 }
  0x27   :  { %v50_v2 = vld [vmem:[#allocation6] sm:$0xff]  ;;  %vm52_vm0 = vcmp.gt.f32.partialorder %v48_v0, 0.0  ;;  %vm53_vm1 = vcmp.gt.f32.partialorder %v49_v1, 0.0  ;;  %v51_v3 = vld [vmem:[#allocation6 + $0x8] sm:$0xff]  ;;  %p231_p3 = scmp.ne.s32.totalorder %s311_s2, %s230_s20  ;;  %p234_p4 = scmp.lt.u32.totalorder %s230_s20, %s311_s2 }
  0x28   :  { %v54_v4 = vsub.f32 %v48_v0, %v50_v2  ;;  %v162_v6 = vsel %vm52_vm0, 1.0, %v250_v5  ;;  %v163_v7 = vsel %vm53_vm1, 1.0, %v250_v5  ;;  %v55_v8 = vsub.f32 %v49_v1, %v51_v3 }
  0x29   :  { %v77_v9 = vadd.f32 %v163_v7, %v162_v6  ;;  %p236_p5 = pnand %p234_p4, %p231_p3 }
  0x2a   :  { %v56_v10 = vand.u32 2147483647, %v54_v4  ;;  %v60_v11 = vmul.f32 %v54_v4, %v54_v4  ;;  %v57_v12 = vand.u32 2147483647, %v55_v8  ;;  %v61_v13 = vmul.f32 %v55_v8, %v55_v8 }
  0x2b   :  { %108 = vadd.xlane.f32.xlu1 %v77_v9 }
  0x2c   :  { %v58_v14 = vsel %vm52_vm0, %v56_v10, 0.0  ;;  %v59_v15 = vsel %vm53_vm1, %v57_v12, 0.0  ;;  %v62_v16 = vsel %vm52_vm0, %v60_v11, 0.0  ;;  %v63_v17 = vsel %vm53_vm1, %v61_v13, 0.0 }
  0x2d   :  { %v69_v18 = vadd.f32 %v59_v15, %v58_v14  ;;  %v81_v19 = vmax.f32 %v58_v14, %v59_v15  ;;  %v73_v21 = vadd.f32 %v63_v17, %v62_v16 }
  0x2f   :  { %88 = vadd.xlane.f32.xlu0 %v69_v18  ;;  %v82_v20 = vmax.f32 %v81_v19, 0.0 }
  0x31   :  { %118 = vmax.xlane.f32.xlu1 %v82_v20 }
  0x33   :  { %98 = vadd.xlane.f32.xlu0 %v73_v21 }
  0xb8   :  { %v109_v22 = vpop.xlane.xlu1 %108 }
  0xb9   :  { %v110_v23 = vrot.slane %v109_v22, 4 }
  0xbb   :  { %v111_v24 = vadd.f32 %v110_v23, %v109_v22 }
  0xbc   :  { %v89_v25 = vpop.xlane.xlu0 %88 }
  0xbd   :  { %v90_v26 = vrot.slane %v89_v25, 4  ;;  %v112_v30 = vrot.slane %v111_v24, 2 }
  0xbe   :  { %v119_v27 = vpop.xlane.xlu1 %118 }
  0xbf   :  { %v91_v28 = vadd.f32 %v90_v26, %v89_v25  ;;  %v120_v29 = vrot.slane %v119_v27, 4  ;;  %v113_v38 = vadd.f32 %v112_v30, %v111_v24 }
  0xc0   :  { %v99_v31 = vpop.xlane.xlu0 %98 }
  0xc1   :  { %v92_v32 = vrot.slane %v91_v28, 2  ;;  %v121_v33 = vmax.f32 %v119_v27, %v120_v29  ;;  %v100_v34 = vrot.slane %v99_v31, 4  ;;  %v114_v44 = vrot.slane %v113_v38, 1 }
  0xc3   :  { %v122_v35 = vrot.slane %v121_v33, 2  ;;  %v101_v36 = vadd.f32 %v100_v34, %v99_v31  ;;  %v93_v37 = vadd.f32 %v92_v32, %v91_v28  ;;  %v115_v48 = vadd.f32 %v114_v44, %v113_v38 }
  0xc5   :  { %v123_v39 = vmax.f32 %v121_v33, %v122_v35  ;;  %v102_v40 = vrot.slane %v101_v36, 2  ;;  %v94_v41 = vrot.slane %v93_v37, 1 }
  0xc7   :  { %v103_v42 = vadd.f32 %v102_v40, %v101_v36  ;;  %v95_v43 = vadd.f32 %v94_v41, %v93_v37  ;;  %v124_v46 = vrot.slane %v123_v39, 1 }
  0xc9   :  { %164 = vpush %v95_v43  ;;  %v104_v45 = vrot.slane %v103_v42, 1  ;;  %v125_v49 = vmax.f32 %v123_v39, %v124_v46 }
  0xcb   :  { %v105_v47 = vadd.f32 %v104_v45, %v103_v42 }
  0xcd   :  { %166 = vpush %v105_v47 }
  0xce   :  { %168 = vpush %v115_v48 }
  0xcf   :  { %170 = vpush %v125_v49 }
  0xfa   :  { %s165_s1 = spop %164 }
  0xfe   :  { %s167_s6 = spop %166 }
  0xff   :  { %s169_s7 = spop %168 }
 0x100   :  { %v128_v50 = vstv %s169_s7  ;;  %s171_s8 = spop %170 }
 0x101   :  { %182 = vrcp.f32 %v128_v50  ;;  %s127_s9 = smul.f32 0.2, %s171_s8 }
 0x103   :  { %s139_s10 = smul.f32 2.0, %s127_s9 }
 0x104   :  { %s137_s12 = smul.f32 %s127_s9, %s127_s9 }
 0x105   :  { %v140_v51 = vstv %s139_s10 }
 0x106   :  { %184 = vrcp.f32 %v140_v51 }
 0x10b   :  { %v183_v52 = vpop.eup %182 }
 0x10c   :  { %172 = vpush %v183_v52 }
 0x110   :  { %v185_v53 = vpop.eup %184 }
 0x111   :  { %174 = vpush %v185_v53 }
 0x13d   :  { %s173_s11 = spop %172 }
 0x13e   :  { %s131_s13 = smul.f32 %s173_s11, %s165_s1 }
 0x13f   :  { %s135_s14 = smul.f32 %s173_s11, %s167_s6 }
 0x140   :  { %p136_p2 = scmp.gt.f32.partialorder %s131_s13, %s127_s9 }
 0x141   :  { %s138_s15 = sadd.f32 %s137_s12, %s135_s14 }
 0x142   :  { %s175_s16 = spop %174 }
 0x143   :  { %s143_s17 = smul.f32 %s175_s16, %s138_s15 }
 0x145   :  { %s313_s17 = smov (!%p136_p2, %s143_s17), %s131_s13 }
 0x146   :  { %146 = sst [smem:[#allocation11]] %s313_s17 }
 0x147   :  { %239 = shalt.err (!%p236_p5)
}
 0x148   :  { %s251_s25 = smov [#allocation11]  }
 0x149   :  { %154 = dma.smem_to_hbm %s251_s25, 16, %s311_s2, [#allocation8]  }
 0x14a   :  { %244 = dma.done.wait [#allocation8], 16  }
 0x14b   :  { %245 = vsyncadd [#allocation8], 4294967280 }
 0x14c   :  { %158 = sfence }
 0x14d   :  { %159 = vsyncpa [#allocation7], 1 }
 0x14e   :  { %160 = vsyncpa [#allocation10], 1 }
 0x14f   :  { %161 = vsyncpa [#allocation8], 1 }

</bundles_post_ra>
